<compile_context>
chip_gen: v7x
topology: tpu7x:2x2x1
jax: 0.10.0
libtpu: 0.0.40
codegen_flags: <defaults>
</compile_context>

<pallas_src>
import functools

import numpy as np
import jax
import jax.numpy as jnp
from jax.experimental import pallas as pl
from jax.experimental.pallas import tpu as pltpu

LANES = 128               # padded hidden / output width (lane-dense)
SUBLANES = 8              # sublane alignment for packed-slab segment offsets
BIAS_LANE = LANES - 1     # padding lane carrying the constant-1 bias pass-through


def _round_up(x, m):
    return (x + m - 1) // m * m


def mlp_kernel(x_ref, p_ref, o_ref, *, n_input, offs):
    """3-layer MLP over one packed (272, 128) f32 parameter slab.

    Slab layout (static, 8-row-aligned offsets):
      [w1_off : w1_off+8 )   W1 (rows 0..n_input-1 used), zero padded
      [b1_off : b1_off+8 )   row 0 = b1, with lane BIAS_LANE set to 1.0
      [w2_off : w2_off+128)  W2 padded; row BIAS_LANE = b2, lane BIAS_LANE = 1.0
      [w3_off : w3_off+128)  W3 padded; row BIAS_LANE = b3
    The 1.0 in lane BIAS_LANE survives ReLU and multiplies the bias rows of
    W2/W3 inside the MXU dots, so no explicit bias adds are needed in-kernel.
    Zero padding everywhere else keeps the math exact.
    """
    w1_off, b1_off, w2_off, w3_off = offs

    x = x_ref[...]                                   # (batch, n_input)

    # ----- layer 1 + ReLU: K = n_input (=2) -> VPU broadcast-FMA, no MXU -----
    h1 = p_ref[b1_off:b1_off + 1, :]                 # (1, LANES); broadcasts over batch
    for k in range(n_input):                         # statically unrolled (tiny K)
        h1 = h1 + x[:, k:k + 1] * p_ref[w1_off + k:w1_off + k + 1, :]
    h1 = jnp.maximum(h1, 0.0)                        # lane BIAS_LANE stays 1.0

    # ----- layer 2 + ReLU: (batch,128) @ (128,128) MXU, bias folded in -----
    w2 = p_ref[w2_off:w2_off + LANES, :]
    h2 = jnp.maximum(jnp.dot(h1, w2, preferred_element_type=jnp.float32), 0.0)

    # ----- layer 3 (no activation), bias folded in; lane-dense padded store --
    w3 = p_ref[w3_off:w3_off + LANES, :]
    o_ref[...] = jnp.dot(h2, w3, preferred_element_type=jnp.float32).astype(o_ref.dtype)


def pack_params(params, n_input, n_hidden, n_output):
    """One-time host-side packing of all weights/biases into a single
    zero-padded (272, 128) f32 slab with biases folded into the weight
    segments.  Returns (device slab, static row offsets)."""
    assert n_input < LANES and n_hidden < LANES and n_output < LANES, (
        "single-slab layout requires all widths < 128 so lane BIAS_LANE is padding")
    w1, b1, w2, b2, w3, b3 = [np.asarray(p, np.float32) for p in params]

    def pad2(a, rows):
        out = np.zeros((rows, LANES), np.float32)
        out[:a.shape[0], :a.shape[1]] = a
        return out

    w1_seg = pad2(w1, _round_up(n_input, SUBLANES))   # W1
    b1_seg = pad2(b1, SUBLANES)                       # b1 (+ bias pass-through)
    b1_seg[0, BIAS_LANE] = 1.0
    w2_seg = pad2(w2, LANES)                          # W2 with b2 in its last row
    w2_seg[BIAS_LANE, :n_hidden] = b2[0, :]
    w2_seg[BIAS_LANE, BIAS_LANE] = 1.0                # keep pass-through alive for layer 3
    w3_seg = pad2(w3, LANES)                          # W3 with b3 in its last row
    w3_seg[BIAS_LANE, :n_output] = b3[0, :]

    segs = [w1_seg, b1_seg, w2_seg, w3_seg]
    offs, off = [], 0
    for s in segs:
        offs.append(off)
        off += s.shape[0]
    packed = jnp.asarray(np.concatenate(segs, axis=0))   # (272, 128) f32 == 136 KiB
    return packed, tuple(offs)


def make_forward(n_input, n_output, offs):
    """Build a jitted forward: one un-gridded pallas_call + fused output slice."""
    kernel = functools.partial(mlp_kernel, n_input=n_input, offs=offs)

    @jax.jit
    def forward(x, packed):
        batch = x.shape[0]
        out_padded = pl.pallas_call(
            kernel,
            out_shape=jax.ShapeDtypeStruct((batch, LANES), jnp.float32),
            in_specs=[
                pl.BlockSpec(memory_space=pltpu.MemorySpace.VMEM),   # x (whole array)
                pl.BlockSpec(memory_space=pltpu.MemorySpace.VMEM),   # packed params, one DMA
            ],
            out_specs=pl.BlockSpec(memory_space=pltpu.MemorySpace.VMEM),
        )(x, packed)
        return out_padded[:, :n_output]   # fuses under jit; drops padded lanes

    return forward


def init_linear(key, fan_in, fan_out):
    # PyTorch nn.Linear default init: U(-1/sqrt(fan_in), 1/sqrt(fan_in))
    kw, kb = jax.random.split(key)
    bound = 1.0 / (fan_in ** 0.5)
    # stored as [in, out] so the kernel computes y = x @ W + b
    w = jax.random.uniform(kw, (fan_in, fan_out), jnp.float32, -bound, bound)
    b = jax.random.uniform(kb, (1, fan_out), jnp.float32, -bound, bound)
    return w, b


def make_params(key, n_input, n_hidden, n_output):
    k1, k2, k3 = jax.random.split(key, 3)
    w1, b1 = init_linear(k1, n_input, n_hidden)
    w2, b2 = init_linear(k2, n_hidden, n_hidden)
    w3, b3 = init_linear(k3, n_hidden, n_output)
    return (w1, b1, w2, b2, w3, b3)


if __name__ == "__main__":
    n_input, n_hidden, n_output = 2, 32, 2
    batch = 8

    key = jax.random.PRNGKey(0)
    kx, kp = jax.random.split(key)
    x = jax.random.normal(kx, (batch, n_input), jnp.float32)
    params = make_params(kp, n_input, n_hidden, n_output)

    # One-time packing (hoisted out of the per-call path) + jitted forward.
    packed, offs = pack_params(params, n_input, n_hidden, n_output)
    packed = jax.device_put(packed)
    forward = make_forward(n_input, n_output, offs)

    out = forward(x, packed)
    jax.block_until_ready(out)

    # pure-JAX reference check against the original (unpadded) parameters
    w1, b1, w2, b2, w3, b3 = params
    h1 = jnp.maximum(x @ w1 + b1, 0.0)
    h2 = jnp.maximum(h1 @ w2 + b2, 0.0)
    ref = h2 @ w3 + b3
    assert out.shape == (batch, n_output)
    assert jnp.allclose(out, ref, atol=1e-5, rtol=1e-5)

    print("KERNEL_OK")
</pallas_src>

<mosaic_0001>
module attributes {stable_mosaic.version = 11 : i64} {
  func.func @mlp_kernel(%arg0: memref<8x2xf32, #tpu.memory_space<vmem>>, %arg1: memref<272x128xf32, #tpu.memory_space<vmem>>, %arg2: memref<8x128xf32, #tpu.memory_space<vmem>>) attributes {dimension_semantics = [], scalar_prefetch = 0 : i64, scratch_operands = 0 : i64, tpu.core_type = #tpu.core_type<tc>} {
    %c0 = arith.constant 0 : index
    %c0_0 = arith.constant 0 : index
    %0 = vector.load %arg0[%c0, %c0_0] : memref<8x2xf32, #tpu.memory_space<vmem>>, vector<8x2xf32>
    %c8 = arith.constant 8 : index
    %c0_1 = arith.constant 0 : index
    %1 = vector.load %arg1[%c8, %c0_1] : memref<272x128xf32, #tpu.memory_space<vmem>>, vector<1x128xf32>
    %2 = vector.extract_strided_slice %0 {offsets = [0, 0], sizes = [8, 1], strides = [1, 1]} : vector<8x2xf32> to vector<8x1xf32>
    %c0_2 = arith.constant 0 : index
    %c0_3 = arith.constant 0 : index
    %3 = vector.load %arg1[%c0_2, %c0_3] : memref<272x128xf32, #tpu.memory_space<vmem>>, vector<1x128xf32>
    %4 = vector.broadcast %2 : vector<8x1xf32> to vector<8x128xf32>
    %5 = vector.broadcast %3 : vector<1x128xf32> to vector<8x128xf32>
    %6 = arith.mulf %4, %5 : vector<8x128xf32>
    %7 = vector.broadcast %1 : vector<1x128xf32> to vector<8x128xf32>
    %8 = arith.addf %7, %6 : vector<8x128xf32>
    %9 = vector.extract_strided_slice %0 {offsets = [0, 1], sizes = [8, 1], strides = [1, 1]} : vector<8x2xf32> to vector<8x1xf32>
    %c1 = arith.constant 1 : index
    %c0_4 = arith.constant 0 : index
    %10 = vector.load %arg1[%c1, %c0_4] : memref<272x128xf32, #tpu.memory_space<vmem>>, vector<1x128xf32>
    %11 = vector.broadcast %9 : vector<8x1xf32> to vector<8x128xf32>
    %12 = vector.broadcast %10 : vector<1x128xf32> to vector<8x128xf32>
    %13 = arith.mulf %11, %12 : vector<8x128xf32>
    %14 = arith.addf %8, %13 : vector<8x128xf32>
    %cst = arith.constant 0.000000e+00 : f32
    %15 = vector.broadcast %cst : f32 to vector<8x128xf32>
    %16 = arith.maximumf %14, %15 : vector<8x128xf32>
    %c16 = arith.constant 16 : index
    %c0_5 = arith.constant 0 : index
    %17 = vector.load %arg1[%c16, %c0_5] : memref<272x128xf32, #tpu.memory_space<vmem>>, vector<128x128xf32>
    %cst_6 = arith.constant dense<0.000000e+00> : vector<8x128xf32>
    %18 = tpu.matmul %16, %17, %cst_6 {dimension_numbers = #tpu.dot_dimension_numbers<[1], [0], [0], [1], [0, 0, 1, 1], [], []>} : vector<8x128xf32>, vector<128x128xf32>, vector<8x128xf32> -> vector<8x128xf32>
    %cst_7 = arith.constant 0.000000e+00 : f32
    %19 = vector.broadcast %cst_7 : f32 to vector<8x128xf32>
    %20 = arith.maximumf %18, %19 : vector<8x128xf32>
    %c144 = arith.constant 144 : index
    %c0_8 = arith.constant 0 : index
    %21 = vector.load %arg1[%c144, %c0_8] : memref<272x128xf32, #tpu.memory_space<vmem>>, vector<128x128xf32>
    %cst_9 = arith.constant dense<0.000000e+00> : vector<8x128xf32>
    %22 = tpu.matmul %20, %21, %cst_9 {dimension_numbers = #tpu.dot_dimension_numbers<[1], [0], [0], [1], [0, 0, 1, 1], [], []>} : vector<8x128xf32>, vector<128x128xf32>, vector<8x128xf32> -> vector<8x128xf32>
    %c0_10 = arith.constant 0 : index
    %c0_11 = arith.constant 0 : index
    %23 = vector.load %arg2[%c0_10, %c0_11] : memref<8x128xf32, #tpu.memory_space<vmem>>, vector<8x128xf32>
    tpu.vector_store %arg2[%c0_10, %c0_11], %22 {strides = array<i32>} : memref<8x128xf32, #tpu.memory_space<vmem>>, vector<8x128xf32>,
    return
  }
}

</mosaic_0001>

<bundles_post_ra>
// kernel: forward.1
= control target key start
LH: loop header
LB: loop body
LE: loop exit
PB: predicated region body
PF: predicated region fallthrough
CT: control target
= control target key end

     0   :  { %7 = vsyncpa [#allocation3], 0  ;;  %s423_s9 = smov [#allocation2]   ;;  %s480_s0 = inlined_call_operand.vmem [shape: f32[8,2], index: 0, kind: input, shape index: {}]   ;;  %s481_s1 = inlined_call_operand.hbm [shape: f32[272,128], index: 1, kind: input, shape index: {}]   ;;  %s482_s2 = inlined_call_operand.vmem [shape: f32[8,128], index: 2, kind: output, shape index: {}]  }
   0x1   :  { %s15_s10 = sshll.u32 %s423_s9, 4  ;;  %s399_s13 = scalar_lea.hbm %s481_s1, 4352  ;;  %s16_s10 = int_to_ptr.vmem [resolvable:$true] %s15_s10 }
   0x2   :  { %p400_p0 = scmp.ne.s32.totalorder %s481_s1, %s399_s13  ;;  %p403_p1 = scmp.lt.u32.totalorder %s399_s13, %s481_s1 }
   0x4   :  { %p405_p2 = pnand %p403_p1, %p400_p0 }
   0x6   :  { %408 = shalt.err (!%p405_p2)
}
   0x7   :  { %s409_s18 = scalar_lea.vmem %s16_s10, 4352  ;;  %p414_p4 = scmp.lt.s32.totalorder %s16_s10, %s16_s10 }
   0x8   :  { %p410_p3 = scmp.ne.s32.totalorder %s16_s10, %s409_s18  ;;  %p415_p5 = scmp.lt.s32.totalorder %s409_s18, %s409_s18 }
   0xa   :  { %p416_p6 = por %p415_p5, %p414_p4 }
   0xc   :  { %p417_p7 = pnand %p416_p6, %p410_p3 }
   0xe   :  { %420 = shalt.err (!%p417_p7)
}
   0xf   :  { %s424_s19 = smov 128   ;;  %s425_s20 = smov 8  }
  0x10   :  { %21 = dma.hbm_to_vmem [thread:$0]  %s481_s1, 4352, %s16_s10, [#allocation3], %s424_s19, %s424_s19, %s425_s20  }
  0x11   :  { %421 = dma.done.wait [#allocation3], 4352  }
  0x12   :  { %422 = vsyncadd [#allocation3], 4294962944  ;;  %v426_v0 = vmov 0   ;;  %v427_v1 = vmov 0.0|0.0   ;;  %v25_v2 = vld [vmem:[%s480_s0] sm:$0xff]  ;;  %v55_v3 = vld [vmem:[#allocation2 + $0x10] sm:$0xff] }
  0x13   :  { %397 = vset.pattern.permute.xlu0 %v426_v0  ;;  %341 = vmatprep.subr.bf16.mxu0 %v427_v1  ;;  %v56_v4 = vld [vmem:[#allocation2 + $0x18] sm:$0xff]  ;;  %v57_v6 = vld [vmem:[#allocation2 + $0x20] sm:$0xff]  ;;  %v58_v7 = vld [vmem:[#allocation2 + $0x28] sm:$0xff]  ;;  %v428_v11 = vmov 1   ;;  %vm429_vm0 = vmmov 0   ;;  %v430_v18 = vmov 0.0  }
  0x14   :  { %365 = vmatprep.subr.bf16.mxu1 %v427_v1  ;;  %30 = vperm.xlu0 %397, %v25_v2   ;;  %v342_v5 = vpack.c.bf16 %v56_v4, %v55_v3  ;;  %v345_v8 = vpack.c.bf16 %v58_v7, %v57_v6  ;;  %v59_v9 = vld [vmem:[#allocation2 + $0x30] sm:$0xff]  ;;  %v60_v10 = vld [vmem:[#allocation2 + $0x38] sm:$0xff]  ;;  %v61_v13 = vld [vmem:[#allocation2 + $0x40] sm:$0xff] }
  0x15   :  { %v348_v12 = vpack.c.bf16 %v60_v10, %v59_v9  ;;  %v62_v14 = vld [vmem:[#allocation2 + $0x48] sm:$0xff]  ;;  %v63_v16 = vld [vmem:[#allocation2 + $0x50] sm:$0xff]  ;;  %v64_v17 = vld [vmem:[#allocation2 + $0x58] sm:$0xff]  ;;  %303 = vmatprep.mubr.msk.f32.mxu0 %vm429_vm0, %v430_v18  ;;  %338 = vmatprep.mubr.msk.f32.mxu1 %vm429_vm0, %v430_v18 }
  0x16   :  { %343 = vmatpush3.bf16.msra.mxu0 %v342_v5  ;;  %v351_v15 = vpack.c.bf16 %v62_v14, %v61_v13  ;;  %v142_v19 = vld [vmem:[#allocation2 + $0x90] sm:$0xff]  ;;  %v143_v20 = vld [vmem:[#allocation2 + $0x98] sm:$0xff]  ;;  %v144_v21 = vld [vmem:[#allocation2 + $0xa0] sm:$0xff]  ;;  %v354_v24 = vpack.c.bf16 %v64_v17, %v63_v16 }
  0x17   :  { %344 = vmatprep.subr.bf16.mxu0 %v427_v1  ;;  %v366_v22 = vpack.c.bf16 %v143_v20, %v142_v19  ;;  %v145_v23 = vld [vmem:[#allocation2 + $0xa8] sm:$0xff]  ;;  %v65_v25 = vld [vmem:[#allocation2 + $0x60] sm:$0xff]  ;;  %v146_v28 = vld [vmem:[#allocation2 + $0xb0] sm:$0xff] }
  0x18   :  { %398 = vset.pattern.permute.xlu0 %v428_v11  ;;  %v369_v26 = vpack.c.bf16 %v145_v23, %v144_v21  ;;  %v66_v27 = vld [vmem:[#allocation2 + $0x68] sm:$0xff]  ;;  %v147_v29 = vld [vmem:[#allocation2 + $0xb8] sm:$0xff]  ;;  %v67_v31 = vld [vmem:[#allocation2 + $0x70] sm:$0xff] }
  0x19   :  { %45 = vperm.xlu0 %398, %v25_v2   ;;  %367 = vmatpush3.bf16.msra.mxu1 %v366_v22  ;;  %v357_v30 = vpack.c.bf16 %v66_v27, %v65_v25  ;;  %v372_v32 = vpack.c.bf16 %v147_v29, %v146_v28  ;;  %v68_v33 = vld [vmem:[#allocation2 + $0x78] sm:$0xff]  ;;  %v148_v34 = vld [vmem:[#allocation2 + $0xc0] sm:$0xff]  ;;  %v149_v35 = vld [vmem:[#allocation2 + $0xc8] sm:$0xff] }
  0x1a   :  { %346 = vmatpush3.bf16.msra.mxu0 %v345_v8  ;;  %368 = vmatprep.subr.bf16.mxu1 %v427_v1  ;;  %v360_v36 = vpack.c.bf16 %v68_v33, %v67_v31  ;;  %v69_v37 = vld [vmem:[#allocation2 + $0x80] sm:$0xff]  ;;  %v375_v38 = vpack.c.bf16 %v149_v35, %v148_v34  ;;  %v70_v39 = vld [vmem:[#allocation2 + $0x88] sm:$0xff]  ;;  %v150_v40 = vld [vmem:[#allocation2 + $0xd0] sm:$0xff] }
  0x1b   :  { %347 = vmatprep.subr.bf16.mxu0 %v427_v1  ;;  %v151_v41 = vld [vmem:[#allocation2 + $0xd8] sm:$0xff]  ;;  %v363_v42 = vpack.c.bf16 %v70_v39, %v69_v37  ;;  %v152_v44 = vld [vmem:[#allocation2 + $0xe0] sm:$0xff]  ;;  %v153_v45 = vld [vmem:[#allocation2 + $0xe8] sm:$0xff] }
  0x1c   :  { %v378_v43 = vpack.c.bf16 %v151_v41, %v150_v40  ;;  %v381_v46 = vpack.c.bf16 %v153_v45, %v152_v44  ;;  %v154_v47 = vld [vmem:[#allocation2 + $0xf0] sm:$0xff]  ;;  %v155_v48 = vld [vmem:[#allocation2 + $0xf8] sm:$0xff]  ;;  %v234_v50 = vld [vmem:[#allocation2] ss:$0 sm:$0xff] }
  0x1d   :  { %370 = vmatpush3.bf16.msra.mxu1 %v369_v26  ;;  %v384_v49 = vpack.c.bf16 %v155_v48, %v154_v47  ;;  %v235_v53 = vld [vmem:[#allocation2 + $0x8] ss:$0 sm:$0xff]  ;;  %v236_v54 = vld [vmem:[#allocation2 + $0x1] ss:$0 sm:$0xff] }
  0x1e   :  { %349 = vmatpush3.bf16.msra.mxu0 %v348_v12  ;;  %371 = vmatprep.subr.bf16.mxu1 %v427_v1  ;;  %v156_v60 = vld [vmem:[#allocation2 + $0x100] sm:$0xff]  ;;  %v157_v61 = vld [vmem:[#allocation2 + $0x108] sm:$0xff] }
  0x1f   :  { %350 = vmatprep.subr.bf16.mxu0 %v427_v1  ;;  %v387_v62 = vpack.c.bf16 %v157_v61, %v156_v60 }
  0x21   :  { %373 = vmatpush3.bf16.msra.mxu1 %v372_v32 }
  0x22   :  { %352 = vmatpush3.bf16.msra.mxu0 %v351_v15  ;;  %374 = vmatprep.subr.bf16.mxu1 %v427_v1 }
  0x23   :  { %353 = vmatprep.subr.bf16.mxu0 %v427_v1 }
  0x25   :  { %376 = vmatpush3.bf16.msra.mxu1 %v375_v38 }
  0x26   :  { %355 = vmatpush3.bf16.msra.mxu0 %v354_v24  ;;  %377 = vmatprep.subr.bf16.mxu1 %v427_v1 }
  0x27   :  { %356 = vmatprep.subr.bf16.mxu0 %v427_v1 }
  0x29   :  { %379 = vmatpush3.bf16.msra.mxu1 %v378_v43 }
  0x2a   :  { %358 = vmatpush3.bf16.msra.mxu0 %v357_v30  ;;  %380 = vmatprep.subr.bf16.mxu1 %v427_v1 }
  0x2b   :  { %359 = vmatprep.subr.bf16.mxu0 %v427_v1 }
  0x2d   :  { %382 = vmatpush3.bf16.msra.mxu1 %v381_v46 }
  0x2e   :  { %361 = vmatpush3.bf16.msra.mxu0 %v360_v36  ;;  %383 = vmatprep.subr.bf16.mxu1 %v427_v1 }
  0x2f   :  { %362 = vmatprep.subr.bf16.mxu0 %v427_v1 }
  0x31   :  { %385 = vmatpush3.bf16.msra.mxu1 %v384_v49 }
  0x32   :  { %364 = vmatpush3.bf16.msra.mxu0 %v363_v42  ;;  %386 = vmatprep.subr.bf16.mxu1 %v427_v1 }
  0x35   :  { %388 = vmatpush3.bf16.msra.mxu1 %v387_v62 }
  0x93   :  { %v31_v51 = vpop.permute.xlu0 %30 }
  0x94   :  { %v37_v52 = vmul.f32 %v234_v50, %v31_v51 }
  0x96   :  { %v42_v56 = vadd.f32 %v235_v53, %v37_v52 }
  0x98   :  { %v46_v55 = vpop.permute.xlu0 %45 }
  0x99   :  { %v52_v57 = vmul.f32 %v236_v54, %v46_v55 }
  0x9b   :  { %v53_v58 = vadd.f32 %v52_v57, %v42_v56 }
  0x9d   :  { %v54_v59 = vmax.f32 %v53_v58, 0.0 }
  0x9f   :  { %304 = vmatmul.mubr.f32.vlgmr.msra.gmra.mrb[0].mxu0 %v54_v59 }
 0x172   :  { %v137_v63 = vpop.f32.mrb[0].mxu0 }
 0x173   :  { %v141_v0 = vmax.f32 %v137_v63, 0.0  ;;  %v305_v2 = vpop.f32.mrb[1].mxu0 }
 0x175   :  { %339 = vmatmul.mubr.f32.vlgmr.msra.gmra.mrb[0].mxu1 %v141_v0 }
 0x248   :  { %v224_v1 = vpop.f32.mrb[0].mxu1 }
 0x249   :  { %228 = vst [vmem:[%s482_s2] sm:$0xff] %v224_v1  ;;  %v340_v3 = vpop.f32.mrb[1].mxu1 }
 0x24a   :  { %233 = vsyncpa [#allocation3], 1 }

</bundles_post_ra>
